<compile_context>
chip_gen: v7x
topology: tpu7x:2x2x1
jax: 0.10.0
libtpu: 0.0.40
codegen_flags: <defaults>
</compile_context>

<pallas_src>
import math

import jax
import jax.numpy as jnp
from jax.experimental import pallas as pl
from jax.experimental.pallas import tpu as pltpu

EPS = 1e-12  # PyTorch F.normalize default eps

_VMEM_LIMIT_BYTES = 40 << 20   # explicit scoped-VMEM limit: headroom on v7x (64 MiB phys), safe on v5e/v6e
_BLOCK_BYTES_F32 = 4 << 20     # per-block streaming target for 4-byte dtypes


# ----------------------------------------------------------------------------
# Kernels
# ----------------------------------------------------------------------------
def _l2_normalize_rows_kernel(x_ref, o_ref):
    # Block: (tile_rows, D); normalize each row over the lane axis.
    x = x_ref[...]
    xf = x.astype(jnp.float32)
    sumsq = jnp.sum(xf * xf, axis=1, keepdims=True)          # (tile_rows, 1) f32
    inv = jax.lax.rsqrt(jnp.maximum(sumsq, EPS * EPS))        # == 1 / max(||row||, eps)
    # f32 multiply, single cast at the end (no bf16 quantization of the scale).
    o_ref[...] = (xf * inv).astype(o_ref.dtype)


def _l2_normalize_channels_kernel(x_ref, o_ref):
    # Block: (1, C, tile_hw); normalize over the C (sublane-side) axis,
    # trailing axis stays lane-dense.
    x = x_ref[...]
    xf = x.astype(jnp.float32)
    sumsq = jnp.sum(xf * xf, axis=1, keepdims=True)           # (1, 1, tile_hw) f32
    inv = jax.lax.rsqrt(jnp.maximum(sumsq, EPS * EPS))
    o_ref[...] = (xf * inv).astype(o_ref.dtype)


# ----------------------------------------------------------------------------
# Tiling helpers
# ----------------------------------------------------------------------------
def _sublane_align(itemsize: int) -> int:
    # Native sublane packing: 8 rows f32, 16 bf16, 32 int8/fp8.
    return 8 * max(1, 4 // itemsize)


def _target_block_bytes(itemsize: int) -> int:
    # Sub-32-bit inputs materialize an f32 temporary inside the kernel, so
    # shrink the native-dtype block target by the expansion factor.
    return max(1 << 20, _BLOCK_BYTES_F32 * itemsize // 4)


def _block_fits_vmem(rows: int, cols: int, itemsize: int) -> bool:
    # in + out double-buffered native blocks (~4x) plus f32 temps (~2 f32 copies),
    # with a few MiB of headroom under the scoped limit.
    footprint = rows * cols * (4 * itemsize + 8)
    return footprint <= _VMEM_LIMIT_BYTES - (4 << 20)


def _choose_tile_rows(N: int, D: int, itemsize: int) -> int:
    align = _sublane_align(itemsize)
    n_aligned = pl.cdiv(N, align) * align
    target = _target_block_bytes(itemsize)
    bytes_per_row = max(1, D * itemsize)
    rows = max(align, (target // bytes_per_row) // align * align)
    rows = min(rows, n_aligned)
    # Round small grids to an even block count so v7x's two TensorCores stay
    # balanced (covers both the "fits in one block" and the odd-small-grid
    # cases); no-op on single-TC v5e/v6e.
    g = pl.cdiv(N, rows)
    if g <= 8 and g % 2 == 1 and n_aligned >= 2 * align:
        rows_even = max(align, pl.cdiv(pl.cdiv(n_aligned, g + 1), align) * align)
        g_even = pl.cdiv(N, rows_even)
        if g_even >= 2 and g_even % 2 == 0:
            rows = rows_even
    return int(rows)


def _choose_tile_hw(C: int, L: int, itemsize: int) -> int:
    target = _target_block_bytes(itemsize)
    if C * L * itemsize <= target:
        return L                      # full trailing dim: always a legal block shape
    # Otherwise a lane-aligned tile (multiple of 128) within the byte budget;
    # the ragged last block is handled by the cdiv grid + masked writeback.
    return max(128, (target // max(1, C * itemsize)) // 128 * 128)


def _compiler_params(semantics):
    return pltpu.CompilerParams(
        dimension_semantics=semantics,
        vmem_limit_bytes=_VMEM_LIMIT_BYTES,
    )


# ----------------------------------------------------------------------------
# Wrappers
# ----------------------------------------------------------------------------
def _ref_normalize_f32(x, dim):
    xf = x.astype(jnp.float32)
    norm = jnp.maximum(jnp.sqrt(jnp.sum(xf * xf, axis=dim, keepdims=True)), EPS)
    return (xf / norm).astype(x.dtype)


def l2_normalize_rows(x2):
    """F.normalize(x2, p=2, dim=1) for a 2-D (N, D) array, D on lanes."""
    N, D = x2.shape
    itemsize = jnp.dtype(x2.dtype).itemsize
    align = _sublane_align(itemsize)
    if not _block_fits_vmem(align, D, itemsize):
        # TODO(synk): D-tiled two-pass Pallas kernel for extremely wide features.
        return _ref_normalize_f32(x2, dim=1)
    tile_rows = _choose_tile_rows(N, D, itemsize)
    grid = (pl.cdiv(N, tile_rows),)
    return pl.pallas_call(
        _l2_normalize_rows_kernel,
        out_shape=jax.ShapeDtypeStruct((N, D), x2.dtype),
        grid=grid,
        in_specs=[pl.BlockSpec((tile_rows, D), lambda i: (i, 0))],
        out_specs=pl.BlockSpec((tile_rows, D), lambda i: (i, 0)),
        compiler_params=_compiler_params(("parallel",)),
    )(x2)


def l2_normalize_channels(x3):
    """F.normalize over axis 1 of a (B, C, L) array; L kept lane-dense."""
    B, C, L = x3.shape
    itemsize = jnp.dtype(x3.dtype).itemsize
    if not _block_fits_vmem(C, min(L, 128), itemsize):
        # TODO(synk): C-tiled accumulation kernel for extremely large channel counts.
        return _ref_normalize_f32(x3, dim=1)
    tile_hw = _choose_tile_hw(C, L, itemsize)
    grid = (B, pl.cdiv(L, tile_hw))
    return pl.pallas_call(
        _l2_normalize_channels_kernel,
        out_shape=jax.ShapeDtypeStruct((B, C, L), x3.dtype),
        grid=grid,
        in_specs=[pl.BlockSpec((1, C, tile_hw), lambda b, j: (b, 0, j))],
        out_specs=pl.BlockSpec((1, C, tile_hw), lambda b, j: (b, 0, j)),
        compiler_params=_compiler_params(("parallel", "parallel")),
    )(x3)


def normalize(x, *, dim=1):
    """General-rank F.normalize(x, p=2, dim=dim) with no materialized transpose."""
    ndim = x.ndim
    d = dim % ndim
    shape = x.shape
    if d == ndim - 1:
        # Normalized axis already last: (prod(lead), D) rows, lane-dense D.
        D = shape[-1]
        y = l2_normalize_rows(x.reshape(-1, D))
        return y.reshape(shape)
    before = math.prod(shape[:d]) if d > 0 else 1
    C = shape[d]
    after = math.prod(shape[d + 1:])
    if after == 1:
        # e.g. (N, C, 1, 1): equivalent to the row case.
        y = l2_normalize_rows(x.reshape(before, C))
        return y.reshape(shape)
    # Interior axis (NCHW dim=1): reshape — free for contiguous inputs — to
    # (before, C, after) and reduce over C with the trailing axis on lanes.
    y = l2_normalize_channels(x.reshape(before, C, after))
    return y.reshape(shape)


# ----------------------------------------------------------------------------
# Self-test
# ----------------------------------------------------------------------------
if __name__ == "__main__":
    key = jax.random.PRNGKey(0)
    k1, k2, k3, k4 = jax.random.split(key, 4)

    # 1) Typical projection-head use: (N, D) f32, dim=1 (row kernel).
    x = jax.random.normal(k1, (8, 256), dtype=jnp.float32)
    out = jax.block_until_ready(normalize(x))
    ref = _ref_normalize_f32(x, dim=1)
    assert jnp.allclose(out, ref, atol=1e-5, rtol=1e-5), "f32 2-D mismatch"
    assert jnp.allclose(jnp.linalg.norm(out, axis=1), 1.0, atol=1e-4)

    # 2) 4-D NCHW input, dim=1 (channel kernel, no transpose): (2, 4, 16, 16).
    x4 = jax.random.normal(k2, (2, 4, 16, 16), dtype=jnp.float32)
    out4 = jax.block_until_ready(normalize(x4))
    ref4 = _ref_normalize_f32(x4, dim=1)
    assert jnp.allclose(out4, ref4, atol=1e-5, rtol=1e-5), "f32 NCHW mismatch"
    assert jnp.allclose(jnp.linalg.norm(out4, axis=1), 1.0, atol=1e-4)

    # 3) bf16 input with ragged N (exercises cdiv grid + masked last block + f32 scale).
    xb = jax.random.normal(k3, (20, 192), dtype=jnp.bfloat16)
    outb = jax.block_until_ready(normalize(xb))
    refb = _ref_normalize_f32(xb, dim=1)
    assert jnp.allclose(outb.astype(jnp.float32), refb.astype(jnp.float32),
                        atol=2e-2, rtol=2e-2), "bf16 mismatch"

    # 4) Odd NCHW-ish shape: C=6, H*W=35 not lane-aligned (full-dim ragged blocks).
    x5 = jax.random.normal(k4, (2, 6, 5, 7), dtype=jnp.float32)
    out5 = jax.block_until_ready(normalize(x5))
    ref5 = _ref_normalize_f32(x5, dim=1)
    assert jnp.allclose(out5, ref5, atol=1e-5, rtol=1e-5), "f32 odd-shape mismatch"

    print("KERNEL_OK")
</pallas_src>

<mosaic_0001>
module attributes {stable_mosaic.version = 11 : i64} {
  func.func @_l2_normalize_rows_kernel(%arg0: i32, %arg1: memref<8x256xf32, #tpu.memory_space<vmem>>, %arg2: memref<8x256xf32, #tpu.memory_space<vmem>>) attributes {dimension_semantics = [#tpu.dimension_semantics<parallel>], iteration_bounds = array<i64: 1>, scalar_prefetch = 0 : i64, scratch_operands = 0 : i64, tpu.core_type = #tpu.core_type<tc>, window_params = [{transform_indices = @transform_0, window_bounds = array<i64: 8, 256>}, {transform_indices = @transform_1, window_bounds = array<i64: 8, 256>}]} {
    %c0 = arith.constant 0 : index
    %c0_0 = arith.constant 0 : index
    %0 = vector.load %arg1[%c0, %c0_0] : memref<8x256xf32, #tpu.memory_space<vmem>>, vector<8x256xf32>
    %1 = arith.mulf %0, %0 : vector<8x256xf32>
    %cst = arith.constant dense<0.000000e+00> : vector<8xf32>
    %2 = vector.multi_reduction <add>, %1, %cst [1] : vector<8x256xf32> to vector<8xf32>
    %3 = vector.shape_cast %2 : vector<8xf32> to vector<8x1xf32>
    %cst_1 = arith.constant 1.000000e-24 : f32
    %4 = vector.broadcast %cst_1 : f32 to vector<8x1xf32>
    %5 = arith.maximumf %3, %4 : vector<8x1xf32>
    %6 = math.rsqrt %5 : vector<8x1xf32>
    %7 = vector.broadcast %6 : vector<8x1xf32> to vector<8x256xf32>
    %8 = arith.mulf %0, %7 : vector<8x256xf32>
    %c0_2 = arith.constant 0 : index
    %c0_3 = arith.constant 0 : index
    %9 = vector.load %arg2[%c0_2, %c0_3] : memref<8x256xf32, #tpu.memory_space<vmem>>, vector<8x256xf32>
    tpu.vector_store %arg2[%c0_2, %c0_3], %8 {strides = array<i32>} : memref<8x256xf32, #tpu.memory_space<vmem>>, vector<8x256xf32>,
    return
  }
  func.func @transform_0(%arg0: i32) -> (i32, i32) {
    %c0_i32 = arith.constant 0 : i32
    %c0_i32_0 = arith.constant 0 : i32
    return %arg0, %c0_i32 : i32, i32
  }
  func.func @transform_1(%arg0: i32) -> (i32, i32) {
    %c0_i32 = arith.constant 0 : i32
    %c0_i32_0 = arith.constant 0 : i32
    return %arg0, %c0_i32 : i32, i32
  }
}

</mosaic_0001>

<bundles_post_ra>
// kernel: tpu_custom_call.1
= control target key start
LH: loop header
LB: loop body
LE: loop exit
PB: predicated region body
PF: predicated region fallthrough
CT: control target
= control target key end

     0   :  { %6 = vsyncpa [#allocation3], 0  ;;  %s137_s0 = inlined_call_operand.hbm [shape: f32[8,256], index: 0, kind: input, shape index: {}]   ;;  %s138_s1 = inlined_call_operand.hbm [shape: f32[8,256], index: 1, kind: output, shape index: {}]  }
   0x1   :  { %7 = vsyncpa [#allocation4], 0  ;;  %s101_s6 = smov [#allocation2]   ;;  %s53_s10 = scalar_lea.hbm %s137_s0, 256 }
   0x2   :  { %s14_s7 = sshll.u32 %s101_s6, 4  ;;  %p54_p0 = scmp.ne.s32.totalorder %s137_s0, %s53_s10  ;;  %s15_s7 = int_to_ptr.vmem [resolvable:$true] %s14_s7 }
   0x3   :  { %p57_p1 = scmp.lt.u32.totalorder %s53_s10, %s137_s0 }
   0x5   :  { %p59_p2 = pnand %p57_p1, %p54_p0 }
   0x7   :  { %62 = shalt.err (!%p59_p2)
}
   0x8   :  { %s63_s15 = scalar_lea.vmem %s15_s7, 256  ;;  %p68_p4 = scmp.lt.s32.totalorder %s15_s7, %s15_s7 }
   0x9   :  { %p64_p3 = scmp.ne.s32.totalorder %s15_s7, %s63_s15  ;;  %p69_p5 = scmp.lt.s32.totalorder %s63_s15, %s63_s15 }
   0xb   :  { %p70_p6 = por %p69_p5, %p68_p4 }
   0xd   :  { %p71_p7 = pnand %p70_p6, %p64_p3 }
   0xf   :  { %74 = shalt.err (!%p71_p7)
}
  0x10   :  { %17 = dma.hbm_to_vmem [thread:$0]  %s137_s0, 256, %s15_s7, [#allocation3]  }
  0x11   :  { %97 = dma.done.wait [#allocation3], 256  }
  0x12   :  { %98 = vsyncadd [#allocation3], 4294967040  ;;  %v21_v0 = vld [vmem:[#allocation2] sm:$0xff]  ;;  %v22_v1 = vld [vmem:[#allocation2 + $0x8] sm:$0xff]  ;;  %s102_s18 = smov [#allocation5]  }
  0x13   :  { %v23_v2 = vmul.f32 %v21_v0, %v21_v0  ;;  %v24_v3 = vmul.f32 %v22_v1, %v22_v1  ;;  %s40_s19 = sshll.u32 %s102_s18, 4  ;;  %s41_s19 = int_to_ptr.vmem [resolvable:$true] %s40_s19 }
  0x14   :  { %s75_s0 = scalar_lea.vmem %s41_s19, 256  ;;  %p80_p9 = scmp.lt.s32.totalorder %s41_s19, %s41_s19 }
  0x15   :  { %v25_v4 = vadd.f32 %v24_v3, %v23_v2  ;;  %p76_p8 = scmp.ne.s32.totalorder %s41_s19, %s75_s0  ;;  %p81_p10 = scmp.lt.s32.totalorder %s75_s0, %s75_s0 }
  0x17   :  { %26 = vadd.xlane.f32.xlu0 %v25_v4  ;;  %p82_p11 = por %p81_p10, %p80_p9 }
  0x19   :  { %p83_p12 = pnand %p82_p11, %p76_p8 }
  0xa4   :  { %v27_v5 = vpop.xlane.xlu0 %26 }
  0xa5   :  { %v28_v6 = vmax.f32 %v27_v5, 1e-24 }
  0xa7   :  { %51 = vrsqrt.f32 %v28_v6 }
  0xb1   :  { %v52_v7 = vpop.eup %51 }
  0xb2   :  { %v30_v8 = vmul.f32 %v52_v7, %v21_v0  ;;  %v31_v9 = vmul.f32 %v52_v7, %v22_v1 }
  0xb4   :  { %32 = vst [vmem:[#allocation5] sm:$0xff] %v30_v8  ;;  %33 = vst [vmem:[#allocation5 + $0x8] sm:$0xff] %v31_v9 }
  0xb5   :  { %86 = shalt.err (!%p83_p12)
}
  0xb6   :  { %s87_s22 = scalar_lea.hbm %s138_s1, 256 }
  0xb7   :  { %p88_p13 = scmp.ne.s32.totalorder %s138_s1, %s87_s22  ;;  %p91_p0 = scmp.lt.u32.totalorder %s87_s22, %s138_s1 }
  0xb9   :  { %p93_p1 = pnand %p91_p0, %p88_p13 }
  0xbb   :  { %96 = shalt.err (!%p93_p1)
}
  0xbc   :  { %43 = dma.vmem_to_hbm [thread:$0]  %s41_s19, 256, %s138_s1, [#allocation4]  }
  0xbd   :  { %99 = dma.done.wait [#allocation4], 256  }
  0xbe   :  { %100 = vsyncadd [#allocation4], 4294967040 }
  0xbf   :  { %47 = vsyncpa [#allocation3], 1 }
  0xc0   :  { %48 = vsyncpa [#allocation4], 1 }

</bundles_post_ra>
